<compile_context>
chip_gen: v7x
topology: tpu7x:2x2x1
jax: 0.10.0
libtpu: 0.0.40
codegen_flags: <defaults>
</compile_context>

<pallas_src>
import math

import jax
import jax.numpy as jnp
from jax.experimental import pallas as pl
from jax.experimental.pallas import tpu as pltpu


def _modrelu_kernel(re_ref, im_ref, cosb_ref, sinb_ref, o_ref):
    # (TR, TF) tiles of Re/Im, (1, TF) broadcast rows of cos(b)/sin(b).
    val = re_ref[...] * cosb_ref[...] - im_ref[...] * sinb_ref[...]
    o_ref[...] = jnp.maximum(val, 0.0)


# ~2 MiB per f32 input block: 3 large streams (re, im, out) x 2 buffers
# ~= 12 MiB resident, fits the v5e 16 MiB scoped-VMEM default and is far
# under the v6e (32/128 MiB) and v7x (32/64 MiB) limits.
_BLOCK_BYTES_TARGET = 2 << 20
_MAX_LANE = 4096          # max lane-dense width for the flattened layout
_MAX_TF = 2048            # feature-axis tile when F is a large multiple of 128


def _choose_lane_width(F, N):
    """Largest L <= _MAX_LANE with L % lcm(F,128) == 0 and N % L == 0, else None."""
    base = (F * 128) // math.gcd(F, 128)      # lcm(F, 128)
    if base > _MAX_LANE or N % base != 0:
        return None
    L = base
    while 2 * L <= _MAX_LANE and N % (2 * L) == 0:
        L *= 2
    return L


def modrelu_pallas_parts(x_re, x_im, b):
    """x_re, x_im: (..., F) float; b: (F,) float. Returns (..., F) float32."""
    orig_shape = x_re.shape
    assert x_im.shape == orig_shape
    F = orig_shape[-1]
    assert b.shape == (F,)
    N = math.prod(orig_shape)

    cos_b = jnp.cos(b).astype(jnp.float32)
    sin_b = jnp.sin(b).astype(jnp.float32)
    x_re = x_re.astype(jnp.float32)
    x_im = x_im.astype(jnp.float32)

    L = _choose_lane_width(F, N)
    if L is not None:
        # Lane-dense flattening: row-major flatten keeps feature index == col % F,
        # so tiling cos(b)/sin(b) L//F times lines the broadcast up exactly.
        lane = L
        rows = N // lane
        re2 = x_re.reshape(rows, lane)
        im2 = x_im.reshape(rows, lane)
        cos2 = jnp.tile(cos_b, lane // F).reshape(1, lane)
        sin2 = jnp.tile(sin_b, lane // F).reshape(1, lane)
    else:
        # General fallback: keep features on the lane axis as-is.
        lane = F
        rows = N // F
        re2 = x_re.reshape(rows, lane)
        im2 = x_im.reshape(rows, lane)
        cos2 = cos_b.reshape(1, lane)
        sin2 = sin_b.reshape(1, lane)

    # Feature-axis tile: lane-dense multiple of 128 when possible, else full extent
    # (equal to the full array dim, which also satisfies the (8,128) rule).
    if lane % 128 == 0:
        TF = min(lane, _MAX_TF)
    else:
        TF = lane

    # Row tile sized against the per-block VMEM budget, multiple of 8
    # (or the full row extent for tiny inputs).
    tr = max(8, (_BLOCK_BYTES_TARGET // (4 * TF)) // 8 * 8)
    TR = rows if rows <= tr else tr

    grid = (pl.cdiv(rows, TR), pl.cdiv(lane, TF))

    out2 = pl.pallas_call(
        _modrelu_kernel,
        out_shape=jax.ShapeDtypeStruct((rows, lane), jnp.float32),
        grid_spec=pltpu.PrefetchScalarGridSpec(
            num_scalar_prefetch=0,
            grid=grid,
            in_specs=[
                pl.BlockSpec((TR, TF), lambda i, j: (i, j)),  # Re tile
                pl.BlockSpec((TR, TF), lambda i, j: (i, j)),  # Im tile
                pl.BlockSpec((1, TF), lambda i, j: (0, j)),   # cos(b) row
                pl.BlockSpec((1, TF), lambda i, j: (0, j)),   # sin(b) row
            ],
            out_specs=pl.BlockSpec((TR, TF), lambda i, j: (i, j)),
        ),
        compiler_params=pltpu.CompilerParams(
            # Both axes independent -> shard across TensorCores on v7x megacore.
            dimension_semantics=("parallel", "parallel")),
    )(re2, im2, cos2, sin2)
    return out2.reshape(orig_shape)


def modrelu_pallas(x, b):
    """Faithful ModReLU.forward: x complex (or real) of shape (..., F), b: (F,)."""
    # TODO(synk): for complex inputs the real/imag split is an extra XLA pass over
    # HBM; fusing an interleaved (re,im) load into the kernel (or fusing ModReLU
    # into the adjacent FFT-filter multiply in FFTNetBlock) would remove it.
    if jnp.iscomplexobj(x):
        x_re = jnp.real(x)
        x_im = jnp.imag(x)
    else:
        x_re = x
        x_im = jnp.zeros_like(x)
    return modrelu_pallas_parts(x_re, x_im, b)


def modrelu_reference(x_complex, b):
    """Plain-JAX replica of the PyTorch forward, for verification."""
    return jnp.abs(x_complex) * jax.nn.relu(jnp.cos(jnp.angle(x_complex) + b))


if __name__ == "__main__":
    # Small shapes consistent with FFTNetBlock usage: (batch, seq, dim) complex.
    B, S, F = 2, 8, 32
    key = jax.random.PRNGKey(0)
    k_re, k_im, k_b = jax.random.split(key, 3)

    x_re = jax.random.normal(k_re, (B, S, F), dtype=jnp.float32)
    x_im = jax.random.normal(k_im, (B, S, F), dtype=jnp.float32)
    # Deterministic init matching nn.Parameter(features).uniform_(-0.1, 0.1)
    b = jax.random.uniform(k_b, (F,), dtype=jnp.float32, minval=-0.1, maxval=0.1)

    x_complex = x_re + 1j * x_im

    out = modrelu_pallas(x_complex, b)
    out = jax.block_until_ready(out)

    # Verify against the literal abs/angle/cos formulation.
    ref = modrelu_reference(x_complex, b)
    assert out.shape == (B, S, F)
    assert jnp.allclose(out, ref, atol=1e-5, rtol=1e-5), "mismatch vs reference"

    # Also verify the split-input entry point used when re/im are already separate.
    out2 = jax.block_until_ready(modrelu_pallas_parts(x_re, x_im, b))
    assert jnp.allclose(out2, ref, atol=1e-5, rtol=1e-5), "mismatch vs reference (parts)"

    print("KERNEL_OK")
</pallas_src>

<mosaic_0001>
module attributes {stable_mosaic.version = 11 : i64} {
  func.func @_modrelu_kernel(%arg0: i32, %arg1: i32, %arg2: memref<1x512xf32, #tpu.memory_space<vmem>>, %arg3: memref<1x512xf32, #tpu.memory_space<vmem>>, %arg4: memref<1x512xf32, #tpu.memory_space<vmem>>, %arg5: memref<1x512xf32, #tpu.memory_space<vmem>>, %arg6: memref<1x512xf32, #tpu.memory_space<vmem>>) attributes {dimension_semantics = [#tpu.dimension_semantics<parallel>, #tpu.dimension_semantics<parallel>], iteration_bounds = array<i64: 1, 1>, scalar_prefetch = 0 : i64, scratch_operands = 0 : i64, tpu.core_type = #tpu.core_type<tc>, window_params = [{transform_indices = @transform_0, window_bounds = array<i64: 1, 512>}, {transform_indices = @transform_1, window_bounds = array<i64: 1, 512>}, {transform_indices = @transform_2, window_bounds = array<i64: 1, 512>}, {transform_indices = @transform_3, window_bounds = array<i64: 1, 512>}, {transform_indices = @transform_4, window_bounds = array<i64: 1, 512>}]} {
    %c0 = arith.constant 0 : index
    %c0_0 = arith.constant 0 : index
    %0 = vector.load %arg2[%c0, %c0_0] : memref<1x512xf32, #tpu.memory_space<vmem>>, vector<1x512xf32>
    %c0_1 = arith.constant 0 : index
    %c0_2 = arith.constant 0 : index
    %1 = vector.load %arg4[%c0_1, %c0_2] : memref<1x512xf32, #tpu.memory_space<vmem>>, vector<1x512xf32>
    %2 = arith.mulf %0, %1 : vector<1x512xf32>
    %c0_3 = arith.constant 0 : index
    %c0_4 = arith.constant 0 : index
    %3 = vector.load %arg3[%c0_3, %c0_4] : memref<1x512xf32, #tpu.memory_space<vmem>>, vector<1x512xf32>
    %c0_5 = arith.constant 0 : index
    %c0_6 = arith.constant 0 : index
    %4 = vector.load %arg5[%c0_5, %c0_6] : memref<1x512xf32, #tpu.memory_space<vmem>>, vector<1x512xf32>
    %5 = arith.mulf %3, %4 : vector<1x512xf32>
    %6 = arith.subf %2, %5 : vector<1x512xf32>
    %cst = arith.constant 0.000000e+00 : f32
    %7 = vector.broadcast %cst : f32 to vector<1x512xf32>
    %8 = arith.maximumf %6, %7 : vector<1x512xf32>
    %c0_7 = arith.constant 0 : index
    %c0_8 = arith.constant 0 : index
    %9 = vector.load %arg6[%c0_7, %c0_8] : memref<1x512xf32, #tpu.memory_space<vmem>>, vector<1x512xf32>
    tpu.vector_store %arg6[%c0_7, %c0_8], %8 {strides = array<i32>} : memref<1x512xf32, #tpu.memory_space<vmem>>, vector<1x512xf32>,
    return
  }
  func.func @transform_0(%arg0: i32, %arg1: i32) -> (i32, i32) {
    %c0_i32 = arith.constant 0 : i32
    return %arg0, %arg1 : i32, i32
  }
  func.func @transform_1(%arg0: i32, %arg1: i32) -> (i32, i32) {
    %c0_i32 = arith.constant 0 : i32
    return %arg0, %arg1 : i32, i32
  }
  func.func @transform_2(%arg0: i32, %arg1: i32) -> (i32, i32) {
    %c0_i32 = arith.constant 0 : i32
    %c0_i32_0 = arith.constant 0 : i32
    return %c0_i32, %arg1 : i32, i32
  }
  func.func @transform_3(%arg0: i32, %arg1: i32) -> (i32, i32) {
    %c0_i32 = arith.constant 0 : i32
    %c0_i32_0 = arith.constant 0 : i32
    return %c0_i32, %arg1 : i32, i32
  }
  func.func @transform_4(%arg0: i32, %arg1: i32) -> (i32, i32) {
    %c0_i32 = arith.constant 0 : i32
    return %arg0, %arg1 : i32, i32
  }
}

</mosaic_0001>

<bundles_post_ra>
// kernel: tpu_custom_call.1
= control target key start
LH: loop header
LB: loop body
LE: loop exit
PB: predicated region body
PF: predicated region fallthrough
CT: control target
= control target key end

     0   :  { %9 = vsyncpa [#allocation3], 0  ;;  %s216_s0 = inlined_call_operand.hbm [shape: f32[1,512], index: 0, kind: input, shape index: {}]   ;;  %s217_s1 = inlined_call_operand.hbm [shape: f32[1,512], index: 1, kind: input, shape index: {}]   ;;  %s218_s2 = inlined_call_operand.vmem [shape: f32[1,512], index: 2, kind: input, shape index: {}]   ;;  %s219_s3 = inlined_call_operand.vmem [shape: f32[1,512], index: 3, kind: input, shape index: {}]   ;;  %s220_s4 = inlined_call_operand.hbm [shape: f32[1,512], index: 4, kind: output, shape index: {}]  }
   0x1   :  { %10 = vsyncpa [#allocation6], 0 }
   0x2   :  { %11 = vsyncpa [#allocation4], 0  ;;  %s146_s15 = smov [#allocation2]   ;;  %s147_s17 = smov [#allocation5]  }
   0x3   :  { %s18_s16 = sshll.u32 %s146_s15, 4  ;;  %s28_s18 = sshll.u32 %s147_s17, 4  ;;  %s19_s16 = int_to_ptr.vmem [resolvable:$true] %s18_s16  ;;  %s29_s18 = int_to_ptr.vmem [resolvable:$true] %s28_s18 }
   0x4   :  { %s74_s21 = scalar_lea.hbm %s216_s0, 64 }
   0x5   :  { %p75_p0 = scmp.ne.s32.totalorder %s216_s0, %s74_s21  ;;  %p78_p1 = scmp.lt.u32.totalorder %s74_s21, %s216_s0 }
   0x7   :  { %p80_p2 = pnand %p78_p1, %p75_p0 }
   0x9   :  { %83 = shalt.err (!%p80_p2)
}
   0xa   :  { %s84_s26 = scalar_lea.vmem %s19_s16, 64  ;;  %p89_p4 = scmp.lt.s32.totalorder %s19_s16, %s19_s16 }
   0xb   :  { %p85_p3 = scmp.ne.s32.totalorder %s19_s16, %s84_s26  ;;  %p90_p5 = scmp.lt.s32.totalorder %s84_s26, %s84_s26 }
   0xd   :  { %p91_p6 = por %p90_p5, %p89_p4 }
   0xf   :  { %p92_p7 = pnand %p91_p6, %p85_p3 }
  0x11   :  { %95 = shalt.err (!%p92_p7)
}
  0x12   :  { %21 = dma.hbm_to_vmem [thread:$0]  %s216_s0, 64, %s19_s16, [#allocation3]  }
  0x13   :  { %s96_s5 = scalar_lea.hbm %s217_s1, 64 }
  0x14   :  { %p97_p8 = scmp.ne.s32.totalorder %s217_s1, %s96_s5  ;;  %p100_p9 = scmp.lt.u32.totalorder %s96_s5, %s217_s1 }
  0x16   :  { %p102_p10 = pnand %p100_p9, %p97_p8 }
  0x18   :  { %105 = shalt.err (!%p102_p10)
}
  0x19   :  { %s106_s10 = scalar_lea.vmem %s29_s18, 64  ;;  %p111_p12 = scmp.lt.s32.totalorder %s29_s18, %s29_s18 }
  0x1a   :  { %p107_p11 = scmp.ne.s32.totalorder %s29_s18, %s106_s10  ;;  %p112_p13 = scmp.lt.s32.totalorder %s106_s10, %s106_s10 }
  0x1c   :  { %p113_p0 = por %p112_p13, %p111_p12 }
  0x1e   :  { %p114_p1 = pnand %p113_p0, %p107_p11 }
  0x20   :  { %117 = shalt.err (!%p114_p1)
}
  0x21   :  { %31 = dma.hbm_to_vmem [thread:$0]  %s217_s1, 64, %s29_s18, [#allocation6]  }
  0x22   :  { %140 = dma.done.wait [#allocation3], 64  }
  0x23   :  { %141 = vsyncadd [#allocation3], 4294967232 }
  0x24   :  { %142 = dma.done.wait [#allocation6], 64  }
  0x25   :  { %143 = vsyncadd [#allocation6], 4294967232  ;;  %v42_v0 = vld [vmem:[#allocation2] sm:$0xf]  ;;  %v45_v2 = vld [vmem:[#allocation5] sm:$0xf]  ;;  %v50_v5 = vlaneseq }
  0x26   :  { %v43_v1 = vld [vmem:[%s218_s2] sm:$0xf]  ;;  %s148_s16 = smov [#allocation7]  }
  0x27   :  { %v44_v3 = vmul.f32 %v43_v1, %v42_v0  ;;  %v46_v4 = vld [vmem:[%s219_s3] sm:$0xf]  ;;  %s61_s17 = sshll.u32 %s148_s16, 4  ;;  %vm52_vm0 = vcmp.lt.s32.totalorder %v50_v5, 512  ;;  %s62_s17 = int_to_ptr.vmem [resolvable:$true] %s61_s17 }
  0x28   :  { %v47_v6 = vmul.f32 %v46_v4, %v45_v2  ;;  %s118_s1 = scalar_lea.vmem %s62_s17, 64  ;;  %p123_p3 = scmp.lt.s32.totalorder %s62_s17, %s62_s17 }
  0x29   :  { %p119_p2 = scmp.ne.s32.totalorder %s62_s17, %s118_s1  ;;  %p124_p4 = scmp.lt.s32.totalorder %s118_s1, %s118_s1 }
  0x2a   :  { %v48_v7 = vsub.f32 %v44_v3, %v47_v6 }
  0x2b   :  { %p125_p5 = por %p124_p4, %p123_p3 }
  0x2c   :  { %v49_v8 = vmax.f32 %v48_v7, 0.0 }
  0x2d   :  { %p126_p6 = pnand %p125_p5, %p119_p2 }
  0x2e   :  { %54 = vst.msk [vmem:[#allocation7] sm:$0xf] %vm52_vm0, %v49_v8 }
  0x2f   :  { %129 = shalt.err (!%p126_p6)
}
  0x30   :  { %s130_s3 = scalar_lea.hbm %s220_s4, 64 }
  0x31   :  { %p131_p7 = scmp.ne.s32.totalorder %s220_s4, %s130_s3  ;;  %p134_p8 = scmp.lt.u32.totalorder %s130_s3, %s220_s4 }
  0x33   :  { %p136_p9 = pnand %p134_p8, %p131_p7 }
  0x35   :  { %139 = shalt.err (!%p136_p9)
}
  0x36   :  { %64 = dma.vmem_to_hbm [thread:$0]  %s62_s17, 64, %s220_s4, [#allocation4]  }
  0x37   :  { %144 = dma.done.wait [#allocation4], 64  }
  0x38   :  { %145 = vsyncadd [#allocation4], 4294967232 }
  0x39   :  { %68 = vsyncpa [#allocation3], 1 }
  0x3a   :  { %69 = vsyncpa [#allocation6], 1 }
  0x3b   :  { %70 = vsyncpa [#allocation4], 1 }

</bundles_post_ra>
